<compile_context>
chip_gen: v7x
topology: tpu7x:2x2x1
jax: 0.10.0
libtpu: 0.0.40
codegen_flags: <defaults>
</compile_context>

<pallas_src>
import functools
import math

import jax
import jax.numpy as jnp
from jax import lax
from jax.experimental import pallas as pl
from jax.experimental.pallas import tpu as pltpu


def _round_up(x, m):
    return ((x + m - 1) // m) * m


def _chunk_vmem_bytes(ct, b_pad, n_inp, h_pad, o_pad):
    """Rough f32 VMEM footprint of one time-chunk (double-buffered blocks)."""
    f = 4
    x_blk = 2 * ct * b_pad * n_inp * f           # input chunk (double buffered)
    st_blk = 2 * ct * b_pad * h_pad * f          # state-history chunk (double buffered)
    xproj = ct * b_pad * h_pad * f               # staged input projection
    wts = 2 * (n_inp * h_pad + h_pad * h_pad + h_pad
               + h_pad * o_pad + o_pad) * f      # resident weights (double buffered)
    misc = b_pad * h_pad * f + 2 * b_pad * o_pad * f
    return x_blk + st_blk + xproj + wts + misc


def _make_rnn_kernel(ct, b_pad, t_valid, needs_mask, unroll):
    """ct: timesteps per chunk; b_pad: padded batch; t_valid: real seq length."""

    def kernel(x_ref, wih_ref, whh_ref, b_ref, wr_ref, br_ref,
               states_ref, out_ref, state_scr, xproj_scr):
        c = pl.program_id(0)
        nc = pl.num_programs(0)

        @pl.when(c == 0)
        def _():
            state_scr[...] = jnp.zeros_like(state_scr)

        # Whole-chunk input projection (one MXU call) with the combined bias
        # folded in, staged into VMEM so the serial time loop only does cheap
        # aligned vector loads per step.
        xproj_scr[...] = (
            jnp.dot(x_ref[...], wih_ref[...], preferred_element_type=jnp.float32)
            + b_ref[...])

        def run_chunk(masked):
            def body(t, h):
                hh = jnp.dot(h, whh_ref[...], preferred_element_type=jnp.float32)
                row = pl.multiple_of(t * b_pad, b_pad)
                new_h = jnp.tanh(xproj_scr[pl.ds(row, b_pad), :] + hh)
                if masked:
                    # Padded tail steps must not advance the state.
                    new_h = jnp.where(c * ct + t < t_valid, new_h, h)
                states_ref[t] = new_h        # full (8,128)-dense store
                return new_h

            h = lax.fori_loop(0, ct, body, state_scr[...], unroll=unroll)
            state_scr[...] = h

        if needs_mask:
            @pl.when(c < nc - 1)
            def _():
                run_chunk(masked=False)

            @pl.when(c == nc - 1)
            def _():
                run_chunk(masked=True)
        else:
            run_chunk(masked=False)

        # Readout of the final hidden state (matches `self.readout(state)`).
        @pl.when(c == nc - 1)
        def _():
            out_ref[...] = (
                jnp.dot(state_scr[...], wr_ref[...],
                        preferred_element_type=jnp.float32) + br_ref[...])

    return kernel


@functools.partial(jax.jit, static_argnames=("t_chunk",))
def rnn_forward(x, w_ih, w_hh, b_ih, b_hh, w_r, b_r, *, t_chunk=128):
    """x: (T, B, n_inp); weights in PyTorch convention:
       w_ih (n_hid, n_inp), w_hh (n_hid, n_hid), w_r (n_out, n_hid).
    Returns (output (B, n_out), state_history (B, n_hid, T))."""
    T, B, n_inp = x.shape
    n_hid = w_hh.shape[0]
    n_out = w_r.shape[0]

    b_pad = _round_up(B, 8)
    h_pad = _round_up(n_hid, 128)
    o_pad = _round_up(n_out, 128)

    # Chunk length: full sequence if it fits, otherwise t_chunk, shrunk until
    # the chunk footprint leaves headroom under v7x's 64 MiB VMEM.
    ct = T if T <= t_chunk else t_chunk
    vmem_budget = 24 << 20
    while ct > 8 and _chunk_vmem_bytes(ct, b_pad, n_inp, h_pad, o_pad) > vmem_budget:
        ct = (ct + 1) // 2
    num_chunks = pl.cdiv(T, ct)
    t_pad = num_chunks * ct
    needs_mask = (t_pad != T)
    unroll = max(1, min(8, ct))

    f32 = jnp.float32

    # Pad batch / hidden / output to full (8,128) tiles; pad time to chunks.
    xp = jnp.zeros((t_pad, b_pad, n_inp), f32).at[:T, :B, :].set(x.astype(f32))
    xf = xp.reshape(t_pad * b_pad, n_inp)

    wih_t = jnp.zeros((n_inp, h_pad), f32).at[:, :n_hid].set(w_ih.astype(f32).T)
    whh_t = jnp.zeros((h_pad, h_pad), f32).at[:n_hid, :n_hid].set(w_hh.astype(f32).T)
    b = jnp.zeros((1, h_pad), f32).at[0, :n_hid].set((b_ih + b_hh).astype(f32))
    wr_t = jnp.zeros((h_pad, o_pad), f32).at[:n_hid, :n_out].set(w_r.astype(f32).T)
    br = jnp.zeros((1, o_pad), f32).at[0, :n_out].set(b_r.astype(f32))

    kernel = _make_rnn_kernel(ct, b_pad, T, needs_mask, unroll)

    vmem_needed = _chunk_vmem_bytes(ct, b_pad, n_inp, h_pad, o_pad)
    vmem_limit = min(64 << 20, max(32 << 20, int(vmem_needed * 1.25) + (4 << 20)))

    states, out_padded = pl.pallas_call(
        kernel,
        out_shape=(
            jax.ShapeDtypeStruct((t_pad, b_pad, h_pad), f32),  # state history
            jax.ShapeDtypeStruct((b_pad, o_pad), f32),         # readout(final)
        ),
        grid_spec=pltpu.PrefetchScalarGridSpec(
            num_scalar_prefetch=0,
            grid=(num_chunks,),
            in_specs=[
                pl.BlockSpec((ct * b_pad, n_inp), lambda c: (c, 0)),  # x chunk
                pl.BlockSpec((n_inp, h_pad), lambda c: (0, 0)),       # W_ih^T
                pl.BlockSpec((h_pad, h_pad), lambda c: (0, 0)),       # W_hh^T
                pl.BlockSpec((1, h_pad), lambda c: (0, 0)),           # b_ih + b_hh
                pl.BlockSpec((h_pad, o_pad), lambda c: (0, 0)),       # W_r^T
                pl.BlockSpec((1, o_pad), lambda c: (0, 0)),           # b_r
            ],
            out_specs=[
                pl.BlockSpec((ct, b_pad, h_pad), lambda c: (c, 0, 0)),  # states chunk
                pl.BlockSpec((b_pad, o_pad), lambda c: (0, 0)),         # output
            ],
            scratch_shapes=[
                pltpu.VMEM((b_pad, h_pad), f32),             # carried hidden state
                pltpu.VMEM((ct * b_pad, h_pad), f32),        # staged x-projection
            ],
        ),
        compiler_params=pltpu.CompilerParams(
            dimension_semantics=("arbitrary",),   # time chunks are sequential
            vmem_limit_bytes=vmem_limit,
        ),
    )(xf, wih_t, whh_t, b, wr_t, br)

    output = out_padded[:B, :n_out]
    # Match `self.state` layout (batch, n_hid, T).  The in-kernel stores are
    # already full-vreg dense; this small layout shuffle stays in the wrapper.
    state_history = jnp.transpose(states[:T, :B, :n_hid], (1, 2, 0))
    return output, state_history


def make_params(key, n_inp, n_hid, n_out):
    """Deterministic init mimicking PyTorch's nn.RNNCell / nn.Linear defaults."""
    k = jax.random.split(key, 6)
    bound = 1.0 / math.sqrt(n_hid)
    w_ih = jax.random.uniform(k[0], (n_hid, n_inp), jnp.float32, -bound, bound)
    w_hh = jax.random.uniform(k[1], (n_hid, n_hid), jnp.float32, -bound, bound)
    b_ih = jax.random.uniform(k[2], (n_hid,), jnp.float32, -bound, bound)
    b_hh = jax.random.uniform(k[3], (n_hid,), jnp.float32, -bound, bound)
    w_r = jax.random.uniform(k[4], (n_out, n_hid), jnp.float32, -bound, bound)
    b_r = jax.random.uniform(k[5], (n_out,), jnp.float32, -bound, bound)
    return w_ih, w_hh, b_ih, b_hh, w_r, b_r


def reference_forward(x, w_ih, w_hh, b_ih, b_hh, w_r, b_r):
    """Pure-JAX reference of the same recurrence (output + state history)."""
    T, B, _ = x.shape
    n_hid = w_hh.shape[0]
    state = jnp.zeros((B, n_hid), jnp.float32)
    hist = []
    for t in range(T):
        state = jnp.tanh(x[t] @ w_ih.T + b_ih + state @ w_hh.T + b_hh)
        hist.append(state)
    out = state @ w_r.T + b_r
    hist = jnp.stack(hist, axis=-1)           # (B, n_hid, T)
    return out, hist


if __name__ == "__main__":
    # Small shapes consistent with the module: seq=8, batch=2, n_inp=4,
    # n_hid=32, n_out=3.  noise=False path.
    # TODO(synk): noise injection branch (x + normal(mean=x, std=0.1)**2) not
    # exercised (noise=False); it is plain-JAX RNG glue outside the kernel.
    T, B, n_inp, n_hid, n_out = 8, 2, 4, 32, 3

    key = jax.random.PRNGKey(0)
    kx, kp = jax.random.split(key)
    x = jax.random.normal(kx, (T, B, n_inp), jnp.float32)
    w_ih, w_hh, b_ih, b_hh, w_r, b_r = make_params(kp, n_inp, n_hid, n_out)

    output, state_history = rnn_forward(x, w_ih, w_hh, b_ih, b_hh, w_r, b_r)
    jax.block_until_ready((output, state_history))

    ref_out, ref_hist = reference_forward(x, w_ih, w_hh, b_ih, b_hh, w_r, b_r)
    assert output.shape == (B, n_out)
    assert state_history.shape == (B, n_hid, T)
    assert jnp.allclose(output, ref_out, atol=1e-5, rtol=1e-5)
    assert jnp.allclose(state_history, ref_hist, atol=1e-5, rtol=1e-5)

    print("KERNEL_OK")
</pallas_src>

<mosaic_0001>
module attributes {stable_mosaic.version = 11 : i64} {
  func.func @kernel(%arg0: i32, %arg1: memref<64x4xf32, #tpu.memory_space<vmem>>, %arg2: memref<4x128xf32, #tpu.memory_space<vmem>>, %arg3: memref<128x128xf32, #tpu.memory_space<vmem>>, %arg4: memref<1x128xf32, #tpu.memory_space<vmem>>, %arg5: memref<128x128xf32, #tpu.memory_space<vmem>>, %arg6: memref<1x128xf32, #tpu.memory_space<vmem>>, %arg7: memref<8x8x128xf32, #tpu.memory_space<vmem>>, %arg8: memref<8x128xf32, #tpu.memory_space<vmem>>, %arg9: memref<8x128xf32, #tpu.memory_space<vmem>>, %arg10: memref<64x128xf32, #tpu.memory_space<vmem>>) attributes {dimension_semantics = [#tpu.dimension_semantics<arbitrary>], iteration_bounds = array<i64: 1>, scalar_prefetch = 0 : i64, scratch_operands = 2 : i64, tpu.core_type = #tpu.core_type<tc>, window_params = [{transform_indices = @transform_0, window_bounds = array<i64: 64, 4>}, {pipeline_mode = #tpu.pipeline_mode<synchronous>, transform_indices = @transform_1, window_bounds = array<i64: 4, 128>}, {pipeline_mode = #tpu.pipeline_mode<synchronous>, transform_indices = @transform_2, window_bounds = array<i64: 128, 128>}, {pipeline_mode = #tpu.pipeline_mode<synchronous>, transform_indices = @transform_3, window_bounds = array<i64: 1, 128>}, {pipeline_mode = #tpu.pipeline_mode<synchronous>, transform_indices = @transform_4, window_bounds = array<i64: 128, 128>}, {pipeline_mode = #tpu.pipeline_mode<synchronous>, transform_indices = @transform_5, window_bounds = array<i64: 1, 128>}, {transform_indices = @transform_6, window_bounds = array<i64: 8, 8, 128>}, {pipeline_mode = #tpu.pipeline_mode<synchronous>, transform_indices = @transform_7, window_bounds = array<i64: 8, 128>}]} {
    %c0_i32 = arith.constant 0 : i32
    %0 = arith.cmpi eq, %arg0, %c0_i32 : i32
    %1 = arith.extui %0 : i1 to i32
    %c0_i32_0 = arith.constant 0 : i32
    %2 = arith.cmpi ne, %1, %c0_i32_0 : i32
    scf.if %2 {
      %cst_71 = arith.constant 0.000000e+00 : f32
      %111 = vector.broadcast %cst_71 : f32 to vector<8x128xf32>
      %c0_72 = arith.constant 0 : index
      %c0_73 = arith.constant 0 : index
      %112 = vector.load %arg9[%c0_72, %c0_73] : memref<8x128xf32, #tpu.memory_space<vmem>>, vector<8x128xf32>
      tpu.vector_store %arg9[%c0_72, %c0_73], %111 {strides = array<i32>} : memref<8x128xf32, #tpu.memory_space<vmem>>, vector<8x128xf32>,
    } else {
    }
    %c0 = arith.constant 0 : index
    %c0_1 = arith.constant 0 : index
    %3 = vector.load %arg1[%c0, %c0_1] : memref<64x4xf32, #tpu.memory_space<vmem>>, vector<64x4xf32>
    %c0_2 = arith.constant 0 : index
    %c0_3 = arith.constant 0 : index
    %4 = vector.load %arg2[%c0_2, %c0_3] : memref<4x128xf32, #tpu.memory_space<vmem>>, vector<4x128xf32>
    %cst = arith.constant dense<0.000000e+00> : vector<64x128xf32>
    %5 = tpu.matmul %3, %4, %cst {dimension_numbers = #tpu.dot_dimension_numbers<[1], [0], [0], [1], [0, 0, 1, 1], [], []>} : vector<64x4xf32>, vector<4x128xf32>, vector<64x128xf32> -> vector<64x128xf32>
    %c0_4 = arith.constant 0 : index
    %c0_5 = arith.constant 0 : index
    %6 = vector.load %arg4[%c0_4, %c0_5] : memref<1x128xf32, #tpu.memory_space<vmem>>, vector<1x128xf32>
    %7 = vector.broadcast %6 : vector<1x128xf32> to vector<64x128xf32>
    %8 = arith.addf %5, %7 : vector<64x128xf32>
    %c0_6 = arith.constant 0 : index
    %c0_7 = arith.constant 0 : index
    %9 = vector.load %arg10[%c0_6, %c0_7] : memref<64x128xf32, #tpu.memory_space<vmem>>, vector<64x128xf32>
    tpu.vector_store %arg10[%c0_6, %c0_7], %8 {strides = array<i32>} : memref<64x128xf32, #tpu.memory_space<vmem>>, vector<64x128xf32>,
    %c0_8 = arith.constant 0 : index
    %c0_9 = arith.constant 0 : index
    %10 = vector.load %arg9[%c0_8, %c0_9] : memref<8x128xf32, #tpu.memory_space<vmem>>, vector<8x128xf32>
    %c0_i32_10 = arith.constant 0 : i32
    %c0_11 = arith.constant 0 : index
    %c0_12 = arith.constant 0 : index
    %11 = vector.load %arg3[%c0_11, %c0_12] : memref<128x128xf32, #tpu.memory_space<vmem>>, vector<128x128xf32>
    %cst_13 = arith.constant dense<0.000000e+00> : vector<8x128xf32>
    %12 = tpu.matmul %10, %11, %cst_13 {dimension_numbers = #tpu.dot_dimension_numbers<[1], [0], [0], [1], [0, 0, 1, 1], [], []>} : vector<8x128xf32>, vector<128x128xf32>, vector<8x128xf32> -> vector<8x128xf32>
    %c8_i32 = arith.constant 8 : i32
    %13 = arith.muli %c0_i32_10, %c8_i32 : i32
    %14 = tpu.assume_multiple %13, 8 : i32
    %15 = arith.index_cast %14 : i32 to index
    %c0_14 = arith.constant 0 : index
    %16 = vector.load %arg10[%15, %c0_14] : memref<64x128xf32, #tpu.memory_space<vmem>>, vector<8x128xf32>
    %17 = arith.addf %16, %12 : vector<8x128xf32>
    %18 = math.tanh %17 : vector<8x128xf32>
    %19 = arith.index_cast %c0_i32_10 : i32 to index
    %c0_15 = arith.constant 0 : index
    %c0_16 = arith.constant 0 : index
    %20 = vector.load %arg7[%19, %c0_15, %c0_16] : memref<8x8x128xf32, #tpu.memory_space<vmem>>, vector<1x8x128xf32>
    %21 = vector.shape_cast %20 : vector<1x8x128xf32> to vector<8x128xf32>
    %22 = vector.shape_cast %18 : vector<8x128xf32> to vector<1x8x128xf32>
    tpu.vector_store %arg7[%19, %c0_15, %c0_16], %22 {strides = array<i32>} : memref<8x8x128xf32, #tpu.memory_space<vmem>>, vector<1x8x128xf32>,
    %c1_i32 = arith.constant 1 : i32
    %c0_17 = arith.constant 0 : index
    %c0_18 = arith.constant 0 : index
    %23 = vector.load %arg3[%c0_17, %c0_18] : memref<128x128xf32, #tpu.memory_space<vmem>>, vector<128x128xf32>
    %cst_19 = arith.constant dense<0.000000e+00> : vector<8x128xf32>
    %24 = tpu.matmul %18, %23, %cst_19 {dimension_numbers = #tpu.dot_dimension_numbers<[1], [0], [0], [1], [0, 0, 1, 1], [], []>} : vector<8x128xf32>, vector<128x128xf32>, vector<8x128xf32> -> vector<8x128xf32>
    %c8_i32_20 = arith.constant 8 : i32
    %25 = arith.muli %c1_i32, %c8_i32_20 : i32
    %26 = tpu.assume_multiple %25, 8 : i32
    %27 = arith.index_cast %26 : i32 to index
    %c0_21 = arith.constant 0 : index
    %28 = vector.load %arg10[%27, %c0_21] : memref<64x128xf32, #tpu.memory_space<vmem>>, vector<8x128xf32>
    %29 = arith.addf %28, %24 : vector<8x128xf32>
    %30 = math.tanh %29 : vector<8x128xf32>
    %31 = arith.index_cast %c1_i32 : i32 to index
    %c0_22 = arith.constant 0 : index
    %c0_23 = arith.constant 0 : index
    %32 = vector.load %arg7[%31, %c0_22, %c0_23] : memref<8x8x128xf32, #tpu.memory_space<vmem>>, vector<1x8x128xf32>
    %33 = vector.shape_cast %32 : vector<1x8x128xf32> to vector<8x128xf32>
    %34 = vector.shape_cast %30 : vector<8x128xf32> to vector<1x8x128xf32>
    tpu.vector_store %arg7[%31, %c0_22, %c0_23], %34 {strides = array<i32>} : memref<8x8x128xf32, #tpu.memory_space<vmem>>, vector<1x8x128xf32>,
    %c2_i32 = arith.constant 2 : i32
    %c0_24 = arith.constant 0 : index
    %c0_25 = arith.constant 0 : index
    %35 = vector.load %arg3[%c0_24, %c0_25] : memref<128x128xf32, #tpu.memory_space<vmem>>, vector<128x128xf32>
    %cst_26 = arith.constant dense<0.000000e+00> : vector<8x128xf32>
    %36 = tpu.matmul %30, %35, %cst_26 {dimension_numbers = #tpu.dot_dimension_numbers<[1], [0], [0], [1], [0, 0, 1, 1], [], []>} : vector<8x128xf32>, vector<128x128xf32>, vector<8x128xf32> -> vector<8x128xf32>
    %c8_i32_27 = arith.constant 8 : i32
    %37 = arith.muli %c2_i32, %c8_i32_27 : i32
    %38 = tpu.assume_multiple %37, 8 : i32
    %39 = arith.index_cast %38 : i32 to index
    %c0_28 = arith.constant 0 : index
    %40 = vector.load %arg10[%39, %c0_28] : memref<64x128xf32, #tpu.memory_space<vmem>>, vector<8x128xf32>
    %41 = arith.addf %40, %36 : vector<8x128xf32>
    %42 = math.tanh %41 : vector<8x128xf32>
    %43 = arith.index_cast %c2_i32 : i32 to index
    %c0_29 = arith.constant 0 : index
    %c0_30 = arith.constant 0 : index
    %44 = vector.load %arg7[%43, %c0_29, %c0_30] : memref<8x8x128xf32, #tpu.memory_space<vmem>>, vector<1x8x128xf32>
    %45 = vector.shape_cast %44 : vector<1x8x128xf32> to vector<8x128xf32>
    %46 = vector.shape_cast %42 : vector<8x128xf32> to vector<1x8x128xf32>
    tpu.vector_store %arg7[%43, %c0_29, %c0_30], %46 {strides = array<i32>} : memref<8x8x128xf32, #tpu.memory_space<vmem>>, vector<1x8x128xf32>,
    %c3_i32 = arith.constant 3 : i32
    %c0_31 = arith.constant 0 : index
    %c0_32 = arith.constant 0 : index
    %47 = vector.load %arg3[%c0_31, %c0_32] : memref<128x128xf32, #tpu.memory_space<vmem>>, vector<128x128xf32>
    %cst_33 = arith.constant dense<0.000000e+00> : vector<8x128xf32>
    %48 = tpu.matmul %42, %47, %cst_33 {dimension_numbers = #tpu.dot_dimension_numbers<[1], [0], [0], [1], [0, 0, 1, 1], [], []>} : vector<8x128xf32>, vector<128x128xf32>, vector<8x128xf32> -> vector<8x128xf32>
    %c8_i32_34 = arith.constant 8 : i32
    %49 = arith.muli %c3_i32, %c8_i32_34 : i32
    %50 = tpu.assume_multiple %49, 8 : i32
    %51 = arith.index_cast %50 : i32 to index
    %c0_35 = arith.constant 0 : index
    %52 = vector.load %arg10[%51, %c0_35] : memref<64x128xf32, #tpu.memory_space<vmem>>, vector<8x128xf32>
    %53 = arith.addf %52, %48 : vector<8x128xf32>
    %54 = math.tanh %53 : vector<8x128xf32>
    %55 = arith.index_cast %c3_i32 : i32 to index
    %c0_36 = arith.constant 0 : index
    %c0_37 = arith.constant 0 : index
    %56 = vector.load %arg7[%55, %c0_36, %c0_37] : memref<8x8x128xf32, #tpu.memory_space<vmem>>, vector<1x8x128xf32>
    %57 = vector.shape_cast %56 : vector<1x8x128xf32> to vector<8x128xf32>
    %58 = vector.shape_cast %54 : vector<8x128xf32> to vector<1x8x128xf32>
    tpu.vector_store %arg7[%55, %c0_36, %c0_37], %58 {strides = array<i32>} : memref<8x8x128xf32, #tpu.memory_space<vmem>>, vector<1x8x128xf32>,
    %c4_i32 = arith.constant 4 : i32
    %c0_38 = arith.constant 0 : index
    %c0_39 = arith.constant 0 : index
    %59 = vector.load %arg3[%c0_38, %c0_39] : memref<128x128xf32, #tpu.memory_space<vmem>>, vector<128x128xf32>
    %cst_40 = arith.constant dense<0.000000e+00> : vector<8x128xf32>
    %60 = tpu.matmul %54, %59, %cst_40 {dimension_numbers = #tpu.dot_dimension_numbers<[1], [0], [0], [1], [0, 0, 1, 1], [], []>} : vector<8x128xf32>, vector<128x128xf32>, vector<8x128xf32> -> vector<8x128xf32>
    %c8_i32_41 = arith.constant 8 : i32
    %61 = arith.muli %c4_i32, %c8_i32_41 : i32
    %62 = tpu.assume_multiple %61, 8 : i32
    %63 = arith.index_cast %62 : i32 to index
    %c0_42 = arith.constant 0 : index
    %64 = vector.load %arg10[%63, %c0_42] : memref<64x128xf32, #tpu.memory_space<vmem>>, vector<8x128xf32>
    %65 = arith.addf %64, %60 : vector<8x128xf32>
    %66 = math.tanh %65 : vector<8x128xf32>
    %67 = arith.index_cast %c4_i32 : i32 to index
    %c0_43 = arith.constant 0 : index
    %c0_44 = arith.constant 0 : index
    %68 = vector.load %arg7[%67, %c0_43, %c0_44] : memref<8x8x128xf32, #tpu.memory_space<vmem>>, vector<1x8x128xf32>
    %69 = vector.shape_cast %68 : vector<1x8x128xf32> to vector<8x128xf32>
    %70 = vector.shape_cast %66 : vector<8x128xf32> to vector<1x8x128xf32>
    tpu.vector_store %arg7[%67, %c0_43, %c0_44], %70 {strides = array<i32>} : memref<8x8x128xf32, #tpu.memory_space<vmem>>, vector<1x8x128xf32>,
    %c5_i32 = arith.constant 5 : i32
    %c0_45 = arith.constant 0 : index
    %c0_46 = arith.constant 0 : index
    %71 = vector.load %arg3[%c0_45, %c0_46] : memref<128x128xf32, #tpu.memory_space<vmem>>, vector<128x128xf32>
    %cst_47 = arith.constant dense<0.000000e+00> : vector<8x128xf32>
    %72 = tpu.matmul %66, %71, %cst_47 {dimension_numbers = #tpu.dot_dimension_numbers<[1], [0], [0], [1], [0, 0, 1, 1], [], []>} : vector<8x128xf32>, vector<128x128xf32>, vector<8x128xf32> -> vector<8x128xf32>
    %c8_i32_48 = arith.constant 8 : i32
    %73 = arith.muli %c5_i32, %c8_i32_48 : i32
    %74 = tpu.assume_multiple %73, 8 : i32
    %75 = arith.index_cast %74 : i32 to index
    %c0_49 = arith.constant 0 : index
    %76 = vector.load %arg10[%75, %c0_49] : memref<64x128xf32, #tpu.memory_space<vmem>>, vector<8x128xf32>
    %77 = arith.addf %76, %72 : vector<8x128xf32>
    %78 = math.tanh %77 : vector<8x128xf32>
    %79 = arith.index_cast %c5_i32 : i32 to index
    %c0_50 = arith.constant 0 : index
    %c0_51 = arith.constant 0 : index
    %80 = vector.load %arg7[%79, %c0_50, %c0_51] : memref<8x8x128xf32, #tpu.memory_space<vmem>>, vector<1x8x128xf32>
    %81 = vector.shape_cast %80 : vector<1x8x128xf32> to vector<8x128xf32>
    %82 = vector.shape_cast %78 : vector<8x128xf32> to vector<1x8x128xf32>
    tpu.vector_store %arg7[%79, %c0_50, %c0_51], %82 {strides = array<i32>} : memref<8x8x128xf32, #tpu.memory_space<vmem>>, vector<1x8x128xf32>,
    %c6_i32 = arith.constant 6 : i32
    %c0_52 = arith.constant 0 : index
    %c0_53 = arith.constant 0 : index
    %83 = vector.load %arg3[%c0_52, %c0_53] : memref<128x128xf32, #tpu.memory_space<vmem>>, vector<128x128xf32>
    %cst_54 = arith.constant dense<0.000000e+00> : vector<8x128xf32>
    %84 = tpu.matmul %78, %83, %cst_54 {dimension_numbers = #tpu.dot_dimension_numbers<[1], [0], [0], [1], [0, 0, 1, 1], [], []>} : vector<8x128xf32>, vector<128x128xf32>, vector<8x128xf32> -> vector<8x128xf32>
    %c8_i32_55 = arith.constant 8 : i32
    %85 = arith.muli %c6_i32, %c8_i32_55 : i32
    %86 = tpu.assume_multiple %85, 8 : i32
    %87 = arith.index_cast %86 : i32 to index
    %c0_56 = arith.constant 0 : index
    %88 = vector.load %arg10[%87, %c0_56] : memref<64x128xf32, #tpu.memory_space<vmem>>, vector<8x128xf32>
    %89 = arith.addf %88, %84 : vector<8x128xf32>
    %90 = math.tanh %89 : vector<8x128xf32>
    %91 = arith.index_cast %c6_i32 : i32 to index
    %c0_57 = arith.constant 0 : index
    %c0_58 = arith.constant 0 : index
    %92 = vector.load %arg7[%91, %c0_57, %c0_58] : memref<8x8x128xf32, #tpu.memory_space<vmem>>, vector<1x8x128xf32>
    %93 = vector.shape_cast %92 : vector<1x8x128xf32> to vector<8x128xf32>
    %94 = vector.shape_cast %90 : vector<8x128xf32> to vector<1x8x128xf32>
    tpu.vector_store %arg7[%91, %c0_57, %c0_58], %94 {strides = array<i32>} : memref<8x8x128xf32, #tpu.memory_space<vmem>>, vector<1x8x128xf32>,
    %c7_i32 = arith.constant 7 : i32
    %c0_59 = arith.constant 0 : index
    %c0_60 = arith.constant 0 : index
    %95 = vector.load %arg3[%c0_59, %c0_60] : memref<128x128xf32, #tpu.memory_space<vmem>>, vector<128x128xf32>
    %cst_61 = arith.constant dense<0.000000e+00> : vector<8x128xf32>
    %96 = tpu.matmul %90, %95, %cst_61 {dimension_numbers = #tpu.dot_dimension_numbers<[1], [0], [0], [1], [0, 0, 1, 1], [], []>} : vector<8x128xf32>, vector<128x128xf32>, vector<8x128xf32> -> vector<8x128xf32>
    %c8_i32_62 = arith.constant 8 : i32
    %97 = arith.muli %c7_i32, %c8_i32_62 : i32
    %98 = tpu.assume_multiple %97, 8 : i32
    %99 = arith.index_cast %98 : i32 to index
    %c0_63 = arith.constant 0 : index
    %100 = vector.load %arg10[%99, %c0_63] : memref<64x128xf32, #tpu.memory_space<vmem>>, vector<8x128xf32>
    %101 = arith.addf %100, %96 : vector<8x128xf32>
    %102 = math.tanh %101 : vector<8x128xf32>
    %103 = arith.index_cast %c7_i32 : i32 to index
    %c0_64 = arith.constant 0 : index
    %c0_65 = arith.constant 0 : index
    %104 = vector.load %arg7[%103, %c0_64, %c0_65] : memref<8x8x128xf32, #tpu.memory_space<vmem>>, vector<1x8x128xf32>
    %105 = vector.shape_cast %104 : vector<1x8x128xf32> to vector<8x128xf32>
    %106 = vector.shape_cast %102 : vector<8x128xf32> to vector<1x8x128xf32>
    tpu.vector_store %arg7[%103, %c0_64, %c0_65], %106 {strides = array<i32>} : memref<8x8x128xf32, #tpu.memory_space<vmem>>, vector<1x8x128xf32>,
    %c8_i32_66 = arith.constant 8 : i32
    %c0_67 = arith.constant 0 : index
    %c0_68 = arith.constant 0 : index
    %107 = vector.load %arg9[%c0_67, %c0_68] : memref<8x128xf32, #tpu.memory_space<vmem>>, vector<8x128xf32>
    tpu.vector_store %arg9[%c0_67, %c0_68], %102 {strides = array<i32>} : memref<8x128xf32, #tpu.memory_space<vmem>>, vector<8x128xf32>,
    %c0_i32_69 = arith.constant 0 : i32
    %108 = arith.cmpi eq, %arg0, %c0_i32_69 : i32
    %109 = arith.extui %108 : i1 to i32
    %c0_i32_70 = arith.constant 0 : i32
    %110 = arith.cmpi ne, %109, %c0_i32_70 : i32
    scf.if %110 {
      %c0_71 = arith.constant 0 : index
      %c0_72 = arith.constant 0 : index
      %111 = vector.load %arg9[%c0_71, %c0_72] : memref<8x128xf32, #tpu.memory_space<vmem>>, vector<8x128xf32>
      %c0_73 = arith.constant 0 : index
      %c0_74 = arith.constant 0 : index
      %112 = vector.load %arg5[%c0_73, %c0_74] : memref<128x128xf32, #tpu.memory_space<vmem>>, vector<128x128xf32>
      %cst_75 = arith.constant dense<0.000000e+00> : vector<8x128xf32>
      %113 = tpu.matmul %111, %112, %cst_75 {dimension_numbers = #tpu.dot_dimension_numbers<[1], [0], [0], [1], [0, 0, 1, 1], [], []>} : vector<8x128xf32>, vector<128x128xf32>, vector<8x128xf32> -> vector<8x128xf32>
      %c0_76 = arith.constant 0 : index
      %c0_77 = arith.constant 0 : index
      %114 = vector.load %arg6[%c0_76, %c0_77] : memref<1x128xf32, #tpu.memory_space<vmem>>, vector<1x128xf32>
      %115 = vector.broadcast %114 : vector<1x128xf32> to vector<8x128xf32>
      %116 = arith.addf %113, %115 : vector<8x128xf32>
      %c0_78 = arith.constant 0 : index
      %c0_79 = arith.constant 0 : index
      %117 = vector.load %arg8[%c0_78, %c0_79] : memref<8x128xf32, #tpu.memory_space<vmem>>, vector<8x128xf32>
      tpu.vector_store %arg8[%c0_78, %c0_79], %116 {strides = array<i32>} : memref<8x128xf32, #tpu.memory_space<vmem>>, vector<8x128xf32>,
    } else {
    }
    return
  }
  func.func @transform_0(%arg0: i32) -> (i32, i32) {
    %c0_i32 = arith.constant 0 : i32
    %c0_i32_0 = arith.constant 0 : i32
    return %arg0, %c0_i32 : i32, i32
  }
  func.func @transform_1(%arg0: i32) -> (i32, i32) {
    %c0_i32 = arith.constant 0 : i32
    %c0_i32_0 = arith.constant 0 : i32
    %c0_i32_1 = arith.constant 0 : i32
    return %c0_i32, %c0_i32_0 : i32, i32
  }
  func.func @transform_2(%arg0: i32) -> (i32, i32) {
    %c0_i32 = arith.constant 0 : i32
    %c0_i32_0 = arith.constant 0 : i32
    %c0_i32_1 = arith.constant 0 : i32
    return %c0_i32, %c0_i32_0 : i32, i32
  }
  func.func @transform_3(%arg0: i32) -> (i32, i32) {
    %c0_i32 = arith.constant 0 : i32
    %c0_i32_0 = arith.constant 0 : i32
    %c0_i32_1 = arith.constant 0 : i32
    return %c0_i32, %c0_i32_0 : i32, i32
  }
  func.func @transform_4(%arg0: i32) -> (i32, i32) {
    %c0_i32 = arith.constant 0 : i32
    %c0_i32_0 = arith.constant 0 : i32
    %c0_i32_1 = arith.constant 0 : i32
    return %c0_i32, %c0_i32_0 : i32, i32
  }
  func.func @transform_5(%arg0: i32) -> (i32, i32) {
    %c0_i32 = arith.constant 0 : i32
    %c0_i32_0 = arith.constant 0 : i32
    %c0_i32_1 = arith.constant 0 : i32
    return %c0_i32, %c0_i32_0 : i32, i32
  }
  func.func @transform_6(%arg0: i32) -> (i32, i32, i32) {
    %c0_i32 = arith.constant 0 : i32
    %c0_i32_0 = arith.constant 0 : i32
    %c0_i32_1 = arith.constant 0 : i32
    return %arg0, %c0_i32, %c0_i32_0 : i32, i32, i32
  }
  func.func @transform_7(%arg0: i32) -> (i32, i32) {
    %c0_i32 = arith.constant 0 : i32
    %c0_i32_0 = arith.constant 0 : i32
    %c0_i32_1 = arith.constant 0 : i32
    return %c0_i32, %c0_i32_0 : i32, i32
  }
}

</mosaic_0001>

<bundles_post_ra>
// kernel: rnn_forward.1
= control target key start
LH: loop header
LB: loop body
LE: loop exit
PB: predicated region body
PF: predicated region fallthrough
CT: control target
= control target key end

     0   :  { %v1774_v0 = vmov 0.0|0.0   ;;  %vm1775_vm0 = vmmov 0   ;;  %v1776_v6 = vmov 0.0   ;;  %vm71_vm1 = vcmask 1043456   ;;  %s2174_s2 = inlined_call_operand.vmem [shape: f32[128,128], index: 2, kind: input, shape index: {}]   ;;  %s2175_s1 = inlined_call_operand.vmem [shape: f32[4,128], index: 1, kind: input, shape index: {}]   ;;  %s2176_s0 = inlined_call_operand.vmem [shape: f32[64,4], index: 0, kind: input, shape index: {}]   ;;  %s2177_s3 = inlined_call_operand.vmem [shape: f32[1,128], index: 3, kind: input, shape index: {}]   ;;  %s2178_s6 = inlined_call_operand.vmem [shape: f32[8,8,128], index: 6, kind: output, shape index: {0}]   ;;  %s2179_s4 = inlined_call_operand.vmem [shape: f32[128,128], index: 4, kind: input, shape index: {}]   ;;  %s2180_s5 = inlined_call_operand.vmem [shape: f32[1,128], index: 5, kind: input, shape index: {}]   ;;  %s2181_s7 = inlined_call_operand.vmem [shape: f32[8,128], index: 7, kind: output, shape index: {1}]  }
   0x1   :  { %1539 = vmatprep.subr.bf16.mxu1 %v1774_v0  ;;  %v189_v1 = vld [vmem:[%s2174_s2] sm:$0xff]  ;;  %v190_v2 = vld [vmem:[%s2174_s2 + $0x8] sm:$0xff]  ;;  %v191_v3 = vld [vmem:[%s2174_s2 + $0x10] sm:$0xff]  ;;  %1256 = vmatprep.mubr.msk.f32.mxu1 %vm1775_vm0, %v1776_v6  ;;  %vm46_vm2 = vcmask 31744  }
   0x2   :  { %v1827_v4 = vpack.c.bf16 %v190_v2, %v189_v1  ;;  %v192_v5 = vld [vmem:[%s2174_s2 + $0x18] sm:$0xff]  ;;  %v193_v8 = vld [vmem:[%s2174_s2 + $0x20] sm:$0xff]  ;;  %v194_v9 = vld [vmem:[%s2174_s2 + $0x28] sm:$0xff] }
   0x3   :  { %v1835_v7 = vpack.c.bf16 %v192_v5, %v191_v3  ;;  %v38_v10 = vld [vmem:[%s2175_s1] sm:$0xf]  ;;  %v31_v12 = vld [vmem:[%s2176_s0 + $0x8] sm:$0xff]  ;;  %v1855_v13 = vpack.c.bf16 %v194_v9, %v193_v8  ;;  %v195_v14 = vld [vmem:[%s2174_s2 + $0x30] sm:$0xff] }
   0x4   :  { %1541 = vmatpush3.bf16.msra.mxu1 %v1827_v4  ;;  %1210 = vmatprep.subr.msk.mxu0 %vm71_vm1, %v38_v10  ;;  %v30_v11 = vld [vmem:[%s2176_s0] sm:$0xff]  ;;  %v196_v15 = vld [vmem:[%s2174_s2 + $0x38] sm:$0xff]  ;;  %v198_v18 = vld [vmem:[%s2174_s2 + $0x48] sm:$0xff] }
   0x5   :  { %1542 = vmatprep.subr.bf16.mxu1 %v1774_v0  ;;  %1211 = vmatpush3.msk.msra.mxu0 %vm71_vm1, %v38_v10  ;;  %v1869_v16 = vpack.c.bf16 %v196_v15, %v195_v14  ;;  %v197_v17 = vld [vmem:[%s2174_s2 + $0x40] sm:$0xff]  ;;  %v199_v20 = vld [vmem:[%s2174_s2 + $0x50] sm:$0xff]  ;;  %v200_v21 = vld [vmem:[%s2174_s2 + $0x58] sm:$0xff] }
   0x6   :  { %1212 = vmatprep.mubr.msk.f32.mxu0 %vm46_vm2, %v30_v11  ;;  %1563 = vmatprep.subr.bf16.mxu0 %v1774_v0  ;;  %v1881_v19 = vpack.c.bf16 %v198_v18, %v197_v17  ;;  %v1893_v22 = vpack.c.bf16 %v200_v21, %v199_v20  ;;  %v201_v23 = vld [vmem:[%s2174_s2 + $0x60] sm:$0xff]  ;;  %v202_v24 = vld [vmem:[%s2174_s2 + $0x68] sm:$0xff]  ;;  %v203_v26 = vld [vmem:[%s2174_s2 + $0x70] sm:$0xff] }
   0x7   :  { %1213 = vmatmul.mubr.msk.f32.vlgmr.msra.gmra.mrb[0].mxu0 %vm46_vm2, %v31_v12  ;;  %v1905_v25 = vpack.c.bf16 %v202_v24, %v201_v23  ;;  %v204_v27 = vld [vmem:[%s2174_s2 + $0x78] sm:$0xff]  ;;  %v32_v29 = vld [vmem:[%s2176_s0 + $0x10] sm:$0xff]  ;;  %v34_v31 = vld [vmem:[%s2176_s0 + $0x20] sm:$0xff] }
   0x8   :  { %1544 = vmatpush3.bf16.msra.mxu1 %v1835_v7  ;;  %1565 = vmatpush3.bf16.msra.mxu0 %v1827_v4  ;;  %v1917_v28 = vpack.c.bf16 %v204_v27, %v203_v26  ;;  %v33_v30 = vld [vmem:[%s2176_s0 + $0x18] sm:$0xff]  ;;  %v35_v32 = vld [vmem:[%s2176_s0 + $0x28] sm:$0xff]  ;;  %v36_v33 = vld [vmem:[%s2176_s0 + $0x30] sm:$0xff] }
   0x9   :  { %1545 = vmatprep.subr.bf16.mxu1 %v1774_v0  ;;  %1566 = vmatprep.subr.bf16.mxu0 %v1774_v0  ;;  %v37_v34 = vld [vmem:[%s2176_s0 + $0x38] sm:$0xff]  ;;  %v1976_v37 = vld [vmem:[%s2177_s3] ss:$0 sm:$0xff]  ;;  %v930_v14 = vld [vmem:[%s2179_s4 + $0x10] sm:$0xff] }
   0xa   :  { %1215 = vmatprep.mubr.msk.f32.mxu0 %vm46_vm2, %v32_v29  ;;  %v928_v12 = vld [vmem:[%s2179_s4] sm:$0xff]  ;;  %v933_v18 = vld [vmem:[%s2179_s4 + $0x28] sm:$0xff]  ;;  %v934_v20 = vld [vmem:[%s2179_s4 + $0x30] sm:$0xff] }
   0xb   :  { %1216 = vmatmul.mubr.msk.f32.gmra.mrb[2].mxu0 %vm46_vm2, %v33_v30  ;;  %v935_v21 = vld [vmem:[%s2179_s4 + $0x38] sm:$0xff]  ;;  %v936_v23 = vld [vmem:[%s2179_s4 + $0x40] sm:$0xff]  ;;  %v937_v24 = vld [vmem:[%s2179_s4 + $0x48] sm:$0xff] }
   0xc   :  { %1547 = vmatpush3.bf16.msra.mxu1 %v1855_v13  ;;  %1568 = vmatpush3.bf16.msra.mxu0 %v1835_v7 }
   0xd   :  { %1548 = vmatprep.subr.bf16.mxu1 %v1774_v0  ;;  %1569 = vmatprep.subr.bf16.mxu0 %v1774_v0 }
   0xe   :  { %1218 = vmatprep.mubr.msk.f32.mxu0 %vm46_vm2, %v34_v31  ;;  %v938_v31 = vld [vmem:[%s2179_s4 + $0x50] sm:$0xff] }
   0xf   :  { %1219 = vmatmul.mubr.msk.f32.gmra.mrb[4].mxu0 %vm46_vm2, %v35_v32  ;;  %v939_v32 = vld [vmem:[%s2179_s4 + $0x58] sm:$0xff] }
  0x10   :  { %1550 = vmatpush3.bf16.msra.mxu1 %v1869_v16  ;;  %1571 = vmatpush3.bf16.msra.mxu0 %v1855_v13 }
  0x11   :  { %1551 = vmatprep.subr.bf16.mxu1 %v1774_v0  ;;  %1572 = vmatprep.subr.bf16.mxu0 %v1774_v0 }
  0x12   :  { %1221 = vmatprep.mubr.msk.f32.mxu0 %vm46_vm2, %v36_v33  ;;  %v1747_v33 = vpack.c.bf16 %v939_v32, %v938_v31 }
  0x13   :  { %1222 = vmatmul.mubr.msk.f32.gmra.mrb[6].mxu0 %vm46_vm2, %v37_v34  ;;  %v940_v34 = vld [vmem:[%s2179_s4 + $0x60] sm:$0xff] }
  0x14   :  { %1553 = vmatpush3.bf16.msra.mxu1 %v1881_v19  ;;  %1574 = vmatpush3.bf16.msra.mxu0 %v1869_v16 }
  0x15   :  { %1554 = vmatprep.subr.bf16.mxu1 %v1774_v0  ;;  %1575 = vmatprep.subr.bf16.mxu0 %v1774_v0 }
  0x16   :  { %1291 = vmatprep.mubr.msk.f32.mxu0 %vm1775_vm0, %v1776_v6 }
  0x18   :  { %1556 = vmatpush3.bf16.msra.mxu1 %v1893_v22  ;;  %1577 = vmatpush3.bf16.msra.mxu0 %v1881_v19 }
  0x19   :  { %1557 = vmatprep.subr.bf16.mxu1 %v1774_v0  ;;  %1578 = vmatprep.subr.bf16.mxu0 %v1774_v0 }
  0x1c   :  { %1559 = vmatpush3.bf16.msra.mxu1 %v1905_v25  ;;  %1580 = vmatpush3.bf16.msra.mxu0 %v1893_v22 }
  0x1d   :  { %1560 = vmatprep.subr.bf16.mxu1 %v1774_v0  ;;  %1581 = vmatprep.subr.bf16.mxu0 %v1774_v0 }
  0x20   :  { %1562 = vmatpush3.bf16.msra.mxu1 %v1917_v28  ;;  %1583 = vmatpush3.bf16.msra.mxu0 %v1905_v25 }
  0x21   :  { %1587 = vmatprep.subr.bf16.mxu1 %v1774_v0  ;;  %1584 = vmatprep.subr.bf16.mxu0 %v1774_v0 }
  0x23   :  { %1257 = vmatmul.mubr.f32.vlgmr.msra.gmra.mrb[0].mxu1 %v1776_v6 }
  0x24   :  { %1589 = vmatpush3.bf16.msra.mxu1 %v1827_v4  ;;  %1326 = vmatprep.mubr.msk.f32.mxu1 %vm1775_vm0, %v1776_v6 }
  0x25   :  { %1590 = vmatprep.subr.bf16.mxu1 %v1774_v0  ;;  %1586 = vmatpush3.bf16.msra.mxu0 %v1917_v28 }
  0x26   :  { %1611 = vmatprep.subr.bf16.mxu0 %v1774_v0 }
  0x28   :  { %1592 = vmatpush3.bf16.msra.mxu1 %v1835_v7 }
  0x29   :  { %1593 = vmatprep.subr.bf16.mxu1 %v1774_v0 }
  0x2c   :  { %1595 = vmatpush3.bf16.msra.mxu1 %v1855_v13 }
  0x2d   :  { %1596 = vmatprep.subr.bf16.mxu1 %v1774_v0 }
  0x30   :  { %1598 = vmatpush3.bf16.msra.mxu1 %v1869_v16 }
  0x31   :  { %1599 = vmatprep.subr.bf16.mxu1 %v1774_v0 }
  0x34   :  { %1601 = vmatpush3.bf16.msra.mxu1 %v1881_v19 }
  0x35   :  { %1602 = vmatprep.subr.bf16.mxu1 %v1774_v0 }
  0x38   :  { %1604 = vmatpush3.bf16.msra.mxu1 %v1893_v22 }
  0x39   :  { %1605 = vmatprep.subr.bf16.mxu1 %v1774_v0 }
  0x3c   :  { %1607 = vmatpush3.bf16.msra.mxu1 %v1905_v25 }
  0x3d   :  { %1608 = vmatprep.subr.bf16.mxu1 %v1774_v0 }
  0x40   :  { %1610 = vmatpush3.bf16.msra.mxu1 %v1917_v28 }
  0x41   :  { %1635 = vmatprep.subr.bf16.mxu1 %v1774_v0 }
  0xda   :  { %v1214_v35 = vpop.f32.mrb[0].mxu0 }
  0xdb   :  { %v141_v36 = vpop.f32.mrb[1].mxu0  ;;  %v147_v49 = vadd.f32 %v1214_v35, %v1976_v37  ;;  %v941_v35 = vld [vmem:[%s2179_s4 + $0x68] sm:$0xff] }
  0xdc   :  { %v142_v38 = vadd.f32 %v1976_v37, %v141_v36  ;;  %v1750_v36 = vpack.c.bf16 %v941_v35, %v940_v34 }
  0xde   :  { %v1217_v43 = vpop.f32.mrb[2].mxu0 }
  0xdf   :  { %v151_v44 = vpop.f32.mrb[3].mxu0  ;;  %v157_v59 = vadd.f32 %v1217_v43, %v1976_v37 }
  0xe0   :  { %v152_v54 = vadd.f32 %v1976_v37, %v151_v44 }
  0xe2   :  { %v2000_v45 = vpop.f32.mrb[4].mxu0 }
  0xe3   :  { %v2002_v46 = vpop.f32.mrb[5].mxu0 }
  0xe4   :  { %v162_v1 = vadd.f32 %v1976_v37, %v2002_v46 }
  0xe6   :  { %v2004_v47 = vpop.f32.mrb[6].mxu0 }
  0xe7   :  { %v2006_v48 = vpop.f32.mrb[7].mxu0 }
  0xe8   :  { %v172_v26 = vadd.f32 %v1976_v37, %v2006_v48 }
  0xf6   :  { %v271_v39 = vpop.f32.mrb[0].mxu1 }
  0xf7   :  { %v276_v40 = vadd.f32 %v271_v39, %v142_v38  ;;  %v1258_v41 = vpop.f32.mrb[1].mxu1  ;;  %v942_v38 = vld [vmem:[%s2179_s4 + $0x70] sm:$0xff]  ;;  %v943_v39 = vld [vmem:[%s2179_s4 + $0x78] sm:$0xff] }
  0xf8   :  { %v177_v41 = vadd.f32 %v2004_v47, %v1976_v37 }
  0xf9   :  { %1758 = vtanh.f32 %v276_v40  ;;  %v1753_v40 = vpack.c.bf16 %v943_v39, %v942_v38 }
 0x103   :  { %v1759_v42 = vpop.eup %1758 }
 0x104   :  { %278 = vst [vmem:[%s2178_s6] sm:$0xff] %v1759_v42  ;;  %1292 = vmatmul.mubr.f32.vlgmr.msra.gmra.mrb[8].mxu0 %v1759_v42 }
 0x105   :  { %1613 = vmatpush3.bf16.msra.mxu0 %v1827_v4  ;;  %1361 = vmatprep.mubr.msk.f32.mxu0 %vm1775_vm0, %v1776_v6 }
 0x106   :  { %1614 = vmatprep.subr.bf16.mxu0 %v1774_v0 }
 0x109   :  { %1616 = vmatpush3.bf16.msra.mxu0 %v1835_v7 }
 0x10a   :  { %1617 = vmatprep.subr.bf16.mxu0 %v1774_v0 }
 0x10d   :  { %1619 = vmatpush3.bf16.msra.mxu0 %v1855_v13 }
 0x10e   :  { %1620 = vmatprep.subr.bf16.mxu0 %v1774_v0 }
 0x111   :  { %1622 = vmatpush3.bf16.msra.mxu0 %v1869_v16 }
 0x112   :  { %1623 = vmatprep.subr.bf16.mxu0 %v1774_v0 }
 0x115   :  { %1625 = vmatpush3.bf16.msra.mxu0 %v1881_v19 }
 0x116   :  { %1626 = vmatprep.subr.bf16.mxu0 %v1774_v0 }
 0x119   :  { %1628 = vmatpush3.bf16.msra.mxu0 %v1893_v22 }
 0x11a   :  { %1629 = vmatprep.subr.bf16.mxu0 %v1774_v0 }
 0x11d   :  { %1631 = vmatpush3.bf16.msra.mxu0 %v1905_v25 }
 0x11e   :  { %1632 = vmatprep.subr.bf16.mxu0 %v1774_v0 }
 0x121   :  { %1634 = vmatpush3.bf16.msra.mxu0 %v1917_v28 }
 0x122   :  { %1659 = vmatprep.subr.bf16.mxu0 %v1774_v0 }
 0x1d7   :  { %v361_v50 = vpop.f32.mrb[8].mxu0 }
 0x1d8   :  { %v367_v51 = vadd.f32 %v361_v50, %v147_v49  ;;  %v1293_v52 = vpop.f32.mrb[9].mxu0 }
 0x1da   :  { %1760 = vtanh.f32 %v367_v51 }
 0x1e4   :  { %v1761_v53 = vpop.eup %1760 }
 0x1e5   :  { %1040 = vst [vmem:[%s2178_s6 + $0x8] sm:$0xff] %v1761_v53  ;;  %1327 = vmatmul.mubr.f32.vlgmr.msra.gmra.mrb[2].mxu1 %v1761_v53 }
 0x1e6   :  { %1637 = vmatpush3.bf16.msra.mxu1 %v1827_v4  ;;  %1396 = vmatprep.mubr.msk.f32.mxu1 %vm1775_vm0, %v1776_v6 }
 0x1e7   :  { %1638 = vmatprep.subr.bf16.mxu1 %v1774_v0 }
 0x1ea   :  { %1640 = vmatpush3.bf16.msra.mxu1 %v1835_v7 }
 0x1eb   :  { %1641 = vmatprep.subr.bf16.mxu1 %v1774_v0 }
 0x1ee   :  { %1643 = vmatpush3.bf16.msra.mxu1 %v1855_v13 }
 0x1ef   :  { %1644 = vmatprep.subr.bf16.mxu1 %v1774_v0 }
 0x1f2   :  { %1646 = vmatpush3.bf16.msra.mxu1 %v1869_v16 }
 0x1f3   :  { %1647 = vmatprep.subr.bf16.mxu1 %v1774_v0 }
 0x1f6   :  { %1649 = vmatpush3.bf16.msra.mxu1 %v1881_v19 }
 0x1f7   :  { %1650 = vmatprep.subr.bf16.mxu1 %v1774_v0 }
 0x1fa   :  { %1652 = vmatpush3.bf16.msra.mxu1 %v1893_v22 }
 0x1fb   :  { %1653 = vmatprep.subr.bf16.mxu1 %v1774_v0 }
 0x1fe   :  { %1655 = vmatpush3.bf16.msra.mxu1 %v1905_v25 }
 0x1ff   :  { %1656 = vmatprep.subr.bf16.mxu1 %v1774_v0 }
 0x202   :  { %1658 = vmatpush3.bf16.msra.mxu1 %v1917_v28 }
 0x203   :  { %1683 = vmatprep.subr.bf16.mxu1 %v1774_v0 }
 0x2b8   :  { %v453_v55 = vpop.f32.mrb[2].mxu1 }
 0x2b9   :  { %v459_v56 = vadd.f32 %v453_v55, %v152_v54  ;;  %v1328_v57 = vpop.f32.mrb[3].mxu1 }
 0x2bb   :  { %1762 = vtanh.f32 %v459_v56 }
 0x2c5   :  { %v1763_v58 = vpop.eup %1762 }
 0x2c6   :  { %1041 = vst [vmem:[%s2178_s6 + $0x10] sm:$0xff] %v1763_v58  ;;  %1362 = vmatmul.mubr.f32.vlgmr.msra.gmra.mrb[10].mxu0 %v1763_v58 }
 0x2c7   :  { %1661 = vmatpush3.bf16.msra.mxu0 %v1827_v4  ;;  %1431 = vmatprep.mubr.msk.f32.mxu0 %vm1775_vm0, %v1776_v6 }
 0x2c8   :  { %1662 = vmatprep.subr.bf16.mxu0 %v1774_v0 }
 0x2cb   :  { %1664 = vmatpush3.bf16.msra.mxu0 %v1835_v7 }
 0x2cc   :  { %1665 = vmatprep.subr.bf16.mxu0 %v1774_v0 }
 0x2cf   :  { %1667 = vmatpush3.bf16.msra.mxu0 %v1855_v13 }
 0x2d0   :  { %1668 = vmatprep.subr.bf16.mxu0 %v1774_v0 }
 0x2d3   :  { %1670 = vmatpush3.bf16.msra.mxu0 %v1869_v16 }
 0x2d4   :  { %1671 = vmatprep.subr.bf16.mxu0 %v1774_v0 }
 0x2d7   :  { %1673 = vmatpush3.bf16.msra.mxu0 %v1881_v19 }
 0x2d8   :  { %1674 = vmatprep.subr.bf16.mxu0 %v1774_v0 }
 0x2db   :  { %1676 = vmatpush3.bf16.msra.mxu0 %v1893_v22 }
 0x2dc   :  { %1677 = vmatprep.subr.bf16.mxu0 %v1774_v0 }
 0x2df   :  { %1679 = vmatpush3.bf16.msra.mxu0 %v1905_v25 }
 0x2e0   :  { %1680 = vmatprep.subr.bf16.mxu0 %v1774_v0 }
 0x2e3   :  { %1682 = vmatpush3.bf16.msra.mxu0 %v1917_v28 }
 0x2e4   :  { %1707 = vmatprep.subr.bf16.mxu0 %v1774_v0 }
 0x399   :  { %v545_v60 = vpop.f32.mrb[10].mxu0 }
 0x39a   :  { %v551_v61 = vadd.f32 %v545_v60, %v157_v59  ;;  %v1363_v62 = vpop.f32.mrb[11].mxu0 }
 0x39c   :  { %1764 = vtanh.f32 %v551_v61 }
 0x3a6   :  { %v1765_v63 = vpop.eup %1764 }
 0x3a7   :  { %1042 = vst [vmem:[%s2178_s6 + $0x18] sm:$0xff] %v1765_v63  ;;  %1397 = vmatmul.mubr.f32.vlgmr.msra.gmra.mrb[4].mxu1 %v1765_v63 }
 0x3a8   :  { %1685 = vmatpush3.bf16.msra.mxu1 %v1827_v4  ;;  %1466 = vmatprep.mubr.msk.f32.mxu1 %vm1775_vm0, %v1776_v6 }
 0x3a9   :  { %1686 = vmatprep.subr.bf16.mxu1 %v1774_v0 }
 0x3ac   :  { %1688 = vmatpush3.bf16.msra.mxu1 %v1835_v7 }
 0x3ad   :  { %1689 = vmatprep.subr.bf16.mxu1 %v1774_v0 }
 0x3b0   :  { %1691 = vmatpush3.bf16.msra.mxu1 %v1855_v13 }
 0x3b1   :  { %1692 = vmatprep.subr.bf16.mxu1 %v1774_v0 }
 0x3b4   :  { %1694 = vmatpush3.bf16.msra.mxu1 %v1869_v16 }
 0x3b5   :  { %1695 = vmatprep.subr.bf16.mxu1 %v1774_v0 }
 0x3b8   :  { %1697 = vmatpush3.bf16.msra.mxu1 %v1881_v19 }
 0x3b9   :  { %1698 = vmatprep.subr.bf16.mxu1 %v1774_v0 }
 0x3bc   :  { %1700 = vmatpush3.bf16.msra.mxu1 %v1893_v22 }
 0x3bd   :  { %1701 = vmatprep.subr.bf16.mxu1 %v1774_v0 }
 0x3c0   :  { %1703 = vmatpush3.bf16.msra.mxu1 %v1905_v25 }
 0x3c1   :  { %1704 = vmatprep.subr.bf16.mxu1 %v1774_v0 }
 0x3c4   :  { %1706 = vmatpush3.bf16.msra.mxu1 %v1917_v28 }
 0x3c5   :  { %1731 = vmatprep.subr.bf16.mxu1 %v1774_v0 }
 0x47a   :  { %v637_v2 = vpop.f32.mrb[4].mxu1 }
 0x47b   :  { %v643_v3 = vadd.f32 %v637_v2, %v162_v1  ;;  %v1398_v5 = vpop.f32.mrb[5].mxu1 }
 0x47d   :  { %1766 = vtanh.f32 %v643_v3 }
 0x487   :  { %v1767_v8 = vpop.eup %1766 }
 0x488   :  { %1043 = vst [vmem:[%s2178_s6 + $0x20] sm:$0xff] %v1767_v8  ;;  %1432 = vmatmul.mubr.f32.vlgmr.msra.gmra.mrb[12].mxu0 %v1767_v8 }
 0x489   :  { %1709 = vmatpush3.bf16.msra.mxu0 %v1827_v4  ;;  %1501 = vmatprep.mubr.msk.f32.mxu0 %vm1775_vm0, %v1776_v6  ;;  %v167_v4 = vadd.f32 %v2000_v45, %v1976_v37 }
 0x48a   :  { %1710 = vmatprep.subr.bf16.mxu0 %v1774_v0 }
 0x48d   :  { %1712 = vmatpush3.bf16.msra.mxu0 %v1835_v7 }
 0x48e   :  { %1713 = vmatprep.subr.bf16.mxu0 %v1774_v0 }
 0x491   :  { %1715 = vmatpush3.bf16.msra.mxu0 %v1855_v13  ;;  %v929_v13 = vld [vmem:[%s2179_s4 + $0x8] sm:$0xff] }
 0x492   :  { %1716 = vmatprep.subr.bf16.mxu0 %v1774_v0  ;;  %v1732_v15 = vpack.c.bf16 %v929_v13, %v928_v12 }
 0x495   :  { %1718 = vmatpush3.bf16.msra.mxu0 %v1869_v16  ;;  %v931_v16 = vld [vmem:[%s2179_s4 + $0x18] sm:$0xff] }
 0x496   :  { %1719 = vmatprep.subr.bf16.mxu0 %v1774_v0  ;;  %v1735_v17 = vpack.c.bf16 %v931_v16, %v930_v14 }
 0x499   :  { %1721 = vmatpush3.bf16.msra.mxu0 %v1881_v19 }
 0x49a   :  { %1722 = vmatprep.subr.bf16.mxu0 %v1774_v0 }
 0x49d   :  { %1724 = vmatpush3.bf16.msra.mxu0 %v1893_v22  ;;  %v1741_v22 = vpack.c.bf16 %v935_v21, %v934_v20 }
 0x49e   :  { %1725 = vmatprep.subr.bf16.mxu0 %v1774_v0 }
 0x4a1   :  { %1727 = vmatpush3.bf16.msra.mxu0 %v1905_v25  ;;  %v1744_v25 = vpack.c.bf16 %v937_v24, %v936_v23 }
 0x4a2   :  { %1728 = vmatprep.subr.bf16.mxu0 %v1774_v0 }
 0x4a5   :  { %1730 = vmatpush3.bf16.msra.mxu0 %v1917_v28 }
 0x55b   :  { %v729_v7 = vpop.f32.mrb[12].mxu0 }
 0x55c   :  { %v735_v9 = vadd.f32 %v729_v7, %v167_v4  ;;  %v1433_v10 = vpop.f32.mrb[13].mxu0 }
 0x55e   :  { %1768 = vtanh.f32 %v735_v9 }
 0x568   :  { %v1769_v11 = vpop.eup %1768 }
 0x569   :  { %1044 = vst [vmem:[%s2178_s6 + $0x28] sm:$0xff] %v1769_v11  ;;  %1467 = vmatmul.mubr.f32.vlgmr.msra.gmra.mrb[6].mxu1 %v1769_v11 }
 0x56a   :  { %1536 = vmatprep.mubr.msk.f32.mxu1 %vm1775_vm0, %v1776_v6  ;;  %1733 = vmatpush3.bf16.msra.mxu1 %v1732_v15  ;;  %v932_v6 = vld [vmem:[%s2179_s4 + $0x20] sm:$0xff] }
 0x56b   :  { %1734 = vmatprep.subr.bf16.mxu1 %v1774_v0  ;;  %v1738_v19 = vpack.c.bf16 %v933_v18, %v932_v6 }
 0x56e   :  { %1736 = vmatpush3.bf16.msra.mxu1 %v1735_v17 }
 0x56f   :  { %1737 = vmatprep.subr.bf16.mxu1 %v1774_v0 }
 0x572   :  { %1739 = vmatpush3.bf16.msra.mxu1 %v1738_v19 }
 0x573   :  { %1740 = vmatprep.subr.bf16.mxu1 %v1774_v0 }
 0x576   :  { %1742 = vmatpush3.bf16.msra.mxu1 %v1741_v22 }
 0x577   :  { %1743 = vmatprep.subr.bf16.mxu1 %v1774_v0 }
 0x57a   :  { %1745 = vmatpush3.bf16.msra.mxu1 %v1744_v25 }
 0x57b   :  { %1746 = vmatprep.subr.bf16.mxu1 %v1774_v0 }
 0x57e   :  { %1748 = vmatpush3.bf16.msra.mxu1 %v1747_v33 }
 0x57f   :  { %1749 = vmatprep.subr.bf16.mxu1 %v1774_v0 }
 0x582   :  { %1751 = vmatpush3.bf16.msra.mxu1 %v1750_v36 }
 0x583   :  { %1752 = vmatprep.subr.bf16.mxu1 %v1774_v0  ;;  %v1047_v0 = vld [vmem:[%s2180_s5] ss:$0 sm:$0xff] }
 0x586   :  { %1754 = vmatpush3.bf16.msra.mxu1 %v1753_v40 }
 0x63c   :  { %v821_v27 = vpop.f32.mrb[6].mxu1 }
 0x63d   :  { %v827_v28 = vadd.f32 %v821_v27, %v172_v26  ;;  %v1468_v29 = vpop.f32.mrb[7].mxu1 }
 0x63f   :  { %1770 = vtanh.f32 %v827_v28 }
 0x649   :  { %v1771_v30 = vpop.eup %1770 }
 0x64a   :  { %1045 = vst [vmem:[%s2178_s6 + $0x30] sm:$0xff] %v1771_v30  ;;  %1502 = vmatmul.mubr.f32.vlgmr.msra.gmra.mrb[14].mxu0 %v1771_v30 }
 0x71d   :  { %v913_v42 = vpop.f32.mrb[14].mxu0 }
 0x71e   :  { %v919_v43 = vadd.f32 %v913_v42, %v177_v41  ;;  %v1503_v44 = vpop.f32.mrb[15].mxu0 }
 0x720   :  { %1772 = vtanh.f32 %v919_v43 }
 0x72a   :  { %v1773_v45 = vpop.eup %1772 }
 0x72b   :  { %1046 = vst [vmem:[%s2178_s6 + $0x38] sm:$0xff] %v1773_v45  ;;  %1537 = vmatmul.mubr.f32.vlgmr.msra.gmra.mrb[8].mxu1 %v1773_v45 }
 0x7fe   :  { %v1017_v46 = vpop.f32.mrb[8].mxu1 }
 0x7ff   :  { %v1018_v48 = vadd.f32 %v1047_v0, %v1017_v46  ;;  %v1538_v49 = vpop.f32.mrb[9].mxu1 }
 0x801   :  { %1021 = vst [vmem:[%s2181_s7] sm:$0xff] %v1018_v48 }

</bundles_post_ra>
